<compile_context>
chip_gen: v5e
topology: v5e:2x2
jax: 0.10.0
libtpu: 0.0.40
codegen_flags: <defaults>
</compile_context>

<pallas_src>
import jax
import jax.numpy as jnp
from jax.experimental import pallas as pl
from jax.experimental.pallas import tpu as pltpu

# ---- module hyper-parameters (synthetic, small) ----
STATE_DIM = 16
ACTION_DIM = 8
HIDDEN_DIM = 32
BATCH = 8
LOG_STD_MIN, LOG_STD_MAX = -5.0, 2.0          # log_std_bounds
_A = 0.5 * (LOG_STD_MAX - LOG_STD_MIN)        # folded rescale constants
_C = LOG_STD_MIN + _A

# packed-slab layout: one (104, 32) f32 slab, all row cuts sublane (8) aligned.
#   rows   0..15  : W1              (16, 32)
#   rows  16..47  : W2              (32, 32)
#   rows  48..79  : [Wmu | Wls | 0] (32, 32)   cols 16..31 zero
#   rows  80..87  : b1 broadcast    ( 8, 32)
#   rows  88..95  : b2 broadcast    ( 8, 32)
#   rows  96..103 : [bmu|bls|0] bc  ( 8, 32)
_W1_ROW = 0
_W2_ROW = STATE_DIM                               # 16
_WH_ROW = STATE_DIM + HIDDEN_DIM                  # 48
_B1_ROW = _WH_ROW + HIDDEN_DIM                    # 80
_B2_ROW = _B1_ROW + 8                             # 88
_BH_ROW = _B2_ROW + 8                             # 96
_SLAB_ROWS = _BH_ROW + 8                          # 104
_SLAB_COLS = HIDDEN_DIM                           # 32


def actor_kernel(obs_ref, w_ref, out_ref):
    x = obs_ref[...]                                          # (B, 16)
    B = x.shape[0]

    # static, sublane-aligned views into the single packed slab
    w1 = w_ref[_W1_ROW:_W1_ROW + STATE_DIM, :]                # (16, 32)
    w2 = w_ref[_W2_ROW:_W2_ROW + HIDDEN_DIM, :]               # (32, 32)
    wh = w_ref[_WH_ROW:_WH_ROW + HIDDEN_DIM, :]               # (32, 32), cols 16.. zero
    b1 = w_ref[_B1_ROW:_B1_ROW + B, :]                        # (B, 32) pre-broadcast
    b2 = w_ref[_B2_ROW:_B2_ROW + B, :]                        # (B, 32)
    bh = w_ref[_BH_ROW:_BH_ROW + B, :]                        # (B, 32), cols 16.. zero

    # x = relu(l1(obs)); x = relu(l2(x))
    h1 = jnp.maximum(jnp.dot(x, w1, preferred_element_type=jnp.float32) + b1, 0.0)
    h2 = jnp.maximum(jnp.dot(h1, w2, preferred_element_type=jnp.float32) + b2, 0.0)

    # fused heads: one MXU pass over the full padded 32-lane block -> [mu | log_std_raw | 0]
    heads = jnp.dot(h2, wh, preferred_element_type=jnp.float32) + bh   # (B, 32)
    mu = heads[:, 0:ACTION_DIM]
    z = heads[:, ACTION_DIM:2 * ACTION_DIM]

    # log_std = tanh(z) rescaled into [min, max]; std = exp(...) with folded constants
    std = jnp.exp(_A * jnp.tanh(z) + _C)

    # three sublane-block stores (no lane concat / shuffle on the output path)
    out_ref[0] = mu
    out_ref[1] = std
    out_ref[2] = jnp.tanh(mu)


def diag_gaussian_actor_forward(obs, params):
    """Full actor MLP in one Pallas kernel (everything fits in VMEM at this size).

    Returns (mu, std, mean) where mean = tanh(mu) (the SquashedNormal mean).

    Production-batch notes (not needed at this toy size):
      * add a batch grid with tile TB a multiple of 8 (>=512 rows amortizes the
        ~0.35us per-step cost), slab BlockSpec index_map = lambda i: (0, 0) so the
        weights stay VMEM-resident, dimension_semantics=("parallel",) so v7x's
        2 TensorCores both get tiles; budget TB against v7x's 64 MiB VMEM
        (32 MiB default scope) including double-buffered obs/out tiles.
      * for truly large batches, flip the layout batch-on-lanes (compute W^T @ X,
        outputs (3*A, B)) to get lane-dense DMAs and unmasked stores.
      * this actor is launch/DMA-latency bound at small B; the biggest win is
        fusing adjacent work (critic head, sampling/log-prob) into the same call.
    """
    B = obs.shape[0]
    assert B <= 8, "bias blocks in the slab are pre-broadcast to 8 rows"
    vmem = pl.BlockSpec(memory_space=pltpu.MemorySpace.VMEM)
    out = pl.pallas_call(
        actor_kernel,
        out_shape=jax.ShapeDtypeStruct((3, B, ACTION_DIM), jnp.float32),
        in_specs=[vmem, vmem],
        out_specs=vmem,
    )(obs, params["w_slab"])
    mu, std, mean = out[0], out[1], out[2]
    return mu, std, mean


def orthogonal(key, out_dim, in_dim):
    """Deterministic orthogonal init (matches nn.init.orthogonal_ semantics:
    rows orthonormal when out_dim <= in_dim, columns otherwise)."""
    a = jax.random.normal(key, (max(out_dim, in_dim), min(out_dim, in_dim)), jnp.float32)
    q, r = jnp.linalg.qr(a)
    d = jnp.diag(r)
    q = q * jnp.where(d >= 0.0, 1.0, -1.0)
    if out_dim < in_dim:
        q = q.T
    return q[:out_dim, :in_dim]


def make_params(key):
    k1, k2, k3, k4 = jax.random.split(key, 4)
    # PyTorch weights are (out, in); store transposed (in, out) for x @ W.
    w1 = orthogonal(k1, HIDDEN_DIM, STATE_DIM).T        # (16, 32)
    w2 = orthogonal(k2, HIDDEN_DIM, HIDDEN_DIM).T       # (32, 32)
    wmu = orthogonal(k3, ACTION_DIM, HIDDEN_DIM).T      # (32, 8)
    wls = orthogonal(k4, ACTION_DIM, HIDDEN_DIM).T      # (32, 8)
    b1 = jnp.zeros((1, HIDDEN_DIM), jnp.float32)
    b2 = jnp.zeros((1, HIDDEN_DIM), jnp.float32)
    bmu = jnp.zeros((1, ACTION_DIM), jnp.float32)
    bls = jnp.zeros((1, ACTION_DIM), jnp.float32)

    # ---- one packed slab: weights + pre-broadcast biases (single weight DMA) ----
    wh = jnp.concatenate([wmu, wls], axis=1)                                  # (32, 16)
    wh_pad = jnp.zeros((HIDDEN_DIM, _SLAB_COLS), jnp.float32).at[:, :2 * ACTION_DIM].set(wh)
    b1_blk = jnp.broadcast_to(b1, (8, _SLAB_COLS))                            # (8, 32)
    b2_blk = jnp.broadcast_to(b2, (8, _SLAB_COLS))                            # (8, 32)
    bh_row = jnp.zeros((1, _SLAB_COLS), jnp.float32).at[:, :2 * ACTION_DIM].set(
        jnp.concatenate([bmu, bls], axis=1))
    bh_blk = jnp.broadcast_to(bh_row, (8, _SLAB_COLS))                        # (8, 32)
    w_slab = jnp.concatenate([w1, w2, wh_pad, b1_blk, b2_blk, bh_blk], axis=0)  # (104, 32)

    return {
        # kernel input
        "w_slab": w_slab,
        # unpacked copies for the pure-JAX reference
        "w1": w1, "b1": b1, "w2": w2, "b2": b2,
        "wmu": wmu, "bmu": bmu, "wls": wls, "bls": bls,
    }


def reference_forward(obs, params):
    h1 = jnp.maximum(obs @ params["w1"] + params["b1"], 0.0)
    h2 = jnp.maximum(h1 @ params["w2"] + params["b2"], 0.0)
    mu = h2 @ params["wmu"] + params["bmu"]
    ls = jnp.tanh(h2 @ params["wls"] + params["bls"])
    ls = LOG_STD_MIN + 0.5 * (LOG_STD_MAX - LOG_STD_MIN) * (ls + 1.0)
    return mu, jnp.exp(ls), jnp.tanh(mu)


if __name__ == "__main__":
    key = jax.random.PRNGKey(0)
    k_obs, k_par = jax.random.split(key)
    obs = jax.random.normal(k_obs, (BATCH, STATE_DIM), jnp.float32)
    params = make_params(k_par)

    mu, std, mean = diag_gaussian_actor_forward(obs, params)
    jax.block_until_ready((mu, std, mean))

    # sanity check against pure-JAX reference
    mu_r, std_r, mean_r = reference_forward(obs, params)
    assert jnp.allclose(mu, mu_r, atol=1e-5, rtol=1e-5)
    assert jnp.allclose(std, std_r, atol=1e-5, rtol=1e-5)
    assert jnp.allclose(mean, mean_r, atol=1e-5, rtol=1e-5)

    print("KERNEL_OK")
</pallas_src>

<mosaic_0001>
module attributes {stable_mosaic.version = 11 : i64} {
  func.func @actor_kernel(%arg0: memref<8x16xf32, #tpu.memory_space<vmem>>, %arg1: memref<104x32xf32, #tpu.memory_space<vmem>>, %arg2: memref<3x8x8xf32, #tpu.memory_space<vmem>>) attributes {dimension_semantics = [], scalar_prefetch = 0 : i64, scratch_operands = 0 : i64, tpu.core_type = #tpu.core_type<tc>} {
    %c0 = arith.constant 0 : index
    %c0_0 = arith.constant 0 : index
    %0 = vector.load %arg0[%c0, %c0_0] : memref<8x16xf32, #tpu.memory_space<vmem>>, vector<8x16xf32>
    %c0_1 = arith.constant 0 : index
    %c0_2 = arith.constant 0 : index
    %1 = vector.load %arg1[%c0_1, %c0_2] : memref<104x32xf32, #tpu.memory_space<vmem>>, vector<16x32xf32>
    %c16 = arith.constant 16 : index
    %c0_3 = arith.constant 0 : index
    %2 = vector.load %arg1[%c16, %c0_3] : memref<104x32xf32, #tpu.memory_space<vmem>>, vector<32x32xf32>
    %c48 = arith.constant 48 : index
    %c0_4 = arith.constant 0 : index
    %3 = vector.load %arg1[%c48, %c0_4] : memref<104x32xf32, #tpu.memory_space<vmem>>, vector<32x32xf32>
    %c80 = arith.constant 80 : index
    %c0_5 = arith.constant 0 : index
    %4 = vector.load %arg1[%c80, %c0_5] : memref<104x32xf32, #tpu.memory_space<vmem>>, vector<8x32xf32>
    %c88 = arith.constant 88 : index
    %c0_6 = arith.constant 0 : index
    %5 = vector.load %arg1[%c88, %c0_6] : memref<104x32xf32, #tpu.memory_space<vmem>>, vector<8x32xf32>
    %c96 = arith.constant 96 : index
    %c0_7 = arith.constant 0 : index
    %6 = vector.load %arg1[%c96, %c0_7] : memref<104x32xf32, #tpu.memory_space<vmem>>, vector<8x32xf32>
    %cst = arith.constant dense<0.000000e+00> : vector<8x32xf32>
    %7 = tpu.matmul %0, %1, %cst {dimension_numbers = #tpu.dot_dimension_numbers<[1], [0], [0], [1], [0, 0, 1, 1], [], []>} : vector<8x16xf32>, vector<16x32xf32>, vector<8x32xf32> -> vector<8x32xf32>
    %8 = arith.addf %7, %4 : vector<8x32xf32>
    %cst_8 = arith.constant 0.000000e+00 : f32
    %9 = vector.broadcast %cst_8 : f32 to vector<8x32xf32>
    %10 = arith.maximumf %8, %9 : vector<8x32xf32>
    %cst_9 = arith.constant dense<0.000000e+00> : vector<8x32xf32>
    %11 = tpu.matmul %10, %2, %cst_9 {dimension_numbers = #tpu.dot_dimension_numbers<[1], [0], [0], [1], [0, 0, 1, 1], [], []>} : vector<8x32xf32>, vector<32x32xf32>, vector<8x32xf32> -> vector<8x32xf32>
    %12 = arith.addf %11, %5 : vector<8x32xf32>
    %cst_10 = arith.constant 0.000000e+00 : f32
    %13 = vector.broadcast %cst_10 : f32 to vector<8x32xf32>
    %14 = arith.maximumf %12, %13 : vector<8x32xf32>
    %cst_11 = arith.constant dense<0.000000e+00> : vector<8x32xf32>
    %15 = tpu.matmul %14, %3, %cst_11 {dimension_numbers = #tpu.dot_dimension_numbers<[1], [0], [0], [1], [0, 0, 1, 1], [], []>} : vector<8x32xf32>, vector<32x32xf32>, vector<8x32xf32> -> vector<8x32xf32>
    %16 = arith.addf %15, %6 : vector<8x32xf32>
    %17 = vector.extract_strided_slice %16 {offsets = [0, 0], sizes = [8, 8], strides = [1, 1]} : vector<8x32xf32> to vector<8x8xf32>
    %18 = vector.extract_strided_slice %16 {offsets = [0, 8], sizes = [8, 8], strides = [1, 1]} : vector<8x32xf32> to vector<8x8xf32>
    %19 = math.tanh %18 : vector<8x8xf32>
    %cst_12 = arith.constant 3.500000e+00 : f32
    %20 = vector.broadcast %cst_12 : f32 to vector<8x8xf32>
    %21 = arith.mulf %20, %19 : vector<8x8xf32>
    %cst_13 = arith.constant -1.500000e+00 : f32
    %22 = vector.broadcast %cst_13 : f32 to vector<8x8xf32>
    %23 = arith.addf %21, %22 : vector<8x8xf32>
    %24 = math.exp %23 : vector<8x8xf32>
    %c0_14 = arith.constant 0 : index
    %c0_15 = arith.constant 0 : index
    %c0_16 = arith.constant 0 : index
    %25 = vector.load %arg2[%c0_14, %c0_15, %c0_16] : memref<3x8x8xf32, #tpu.memory_space<vmem>>, vector<1x8x8xf32>
    %26 = vector.shape_cast %25 : vector<1x8x8xf32> to vector<8x8xf32>
    %27 = vector.shape_cast %17 : vector<8x8xf32> to vector<1x8x8xf32>
    tpu.vector_store %arg2[%c0_14, %c0_15, %c0_16], %27 {strides = array<i32>} : memref<3x8x8xf32, #tpu.memory_space<vmem>>, vector<1x8x8xf32>,
    %c1 = arith.constant 1 : index
    %c0_17 = arith.constant 0 : index
    %c0_18 = arith.constant 0 : index
    %28 = vector.load %arg2[%c1, %c0_17, %c0_18] : memref<3x8x8xf32, #tpu.memory_space<vmem>>, vector<1x8x8xf32>
    %29 = vector.shape_cast %28 : vector<1x8x8xf32> to vector<8x8xf32>
    %30 = vector.shape_cast %24 : vector<8x8xf32> to vector<1x8x8xf32>
    tpu.vector_store %arg2[%c1, %c0_17, %c0_18], %30 {strides = array<i32>} : memref<3x8x8xf32, #tpu.memory_space<vmem>>, vector<1x8x8xf32>,
    %31 = math.tanh %17 : vector<8x8xf32>
    %c2 = arith.constant 2 : index
    %c0_19 = arith.constant 0 : index
    %c0_20 = arith.constant 0 : index
    %32 = vector.load %arg2[%c2, %c0_19, %c0_20] : memref<3x8x8xf32, #tpu.memory_space<vmem>>, vector<1x8x8xf32>
    %33 = vector.shape_cast %32 : vector<1x8x8xf32> to vector<8x8xf32>
    %34 = vector.shape_cast %31 : vector<8x8xf32> to vector<1x8x8xf32>
    tpu.vector_store %arg2[%c2, %c0_19, %c0_20], %34 {strides = array<i32>} : memref<3x8x8xf32, #tpu.memory_space<vmem>>, vector<1x8x8xf32>,
    return
  }
}

</mosaic_0001>

<bundles_post_ra>
// kernel: tpu_custom_call.1
= control target key start
LH: loop header
LB: loop body
LE: loop exit
PB: predicated region body
PF: predicated region fallthrough
CT: control target
= control target key end

     0   :  { %vm26_vm0 = vcmask 130048   ;;  %s236_s0 = inlined_call_operand.vmem [shape: f32[8,16], index: 0, kind: input, shape index: {}]   ;;  %s237_s1 = inlined_call_operand.vmem [shape: f32[104,32], index: 1, kind: input, shape index: {}]   ;;  %s238_s2 = inlined_call_operand.hbm [shape: f32[3,8,8], index: 2, kind: output, shape index: {}]  }
   0x1   :  { %v14_v0 = vld [vmem:[%s237_s1 + $0x8] sm:$0xff]  ;;  %v13_v1 = vld [vmem:[%s237_s1] sm:$0xff] }
   0x2   :  { %44 = vmatpush.msra.mxu0 %v14_v0  ;;  %v12_v2 = vld [vmem:[%s236_s0] sm:$0xff]  ;;  %v18_v3 = vld [vmem:[%s237_s1 + $0x28] sm:$0xff] }
   0x3   :  { %7 = vsyncpa [#allocation3], 0  ;;  %67 = vmatpush.msra.mxu1 %v18_v3  ;;  %v17_v4 = vld [vmem:[%s237_s1 + $0x20] sm:$0xff]  ;;  %v16_v5 = vld [vmem:[%s237_s1 + $0x18] sm:$0xff]  ;;  %vm51_vm1 = vcmask 261120   ;;  %vm104_vm2 = vcmask 64512  }
   0x4   :  { %45 = vmatpush.msra.mxu0 %v13_v1  ;;  %v15_v6 = vld [vmem:[%s237_s1 + $0x10] sm:$0xff]  ;;  %v22_v7 = vld [vmem:[%s237_s1 + $0x48] sm:$0xff]  ;;  %v21_v12 = vld [vmem:[%s237_s1 + $0x40] sm:$0xff]  ;;  %s169_s8 = smov 120   ;;  %s170_s9 = smov [#allocation2]  }
   0x5   :  { %132 = vmatmul.msk.f32.vlgmr.msra.gmra.mxu0 %vm26_vm0, %v12_v2  ;;  %68 = vmatpush.msra.mxu1 %v17_v4  ;;  %v23_v8 = vld [vmem:[%s237_s1 + $0x50] sm:$0xff]  ;;  %v20_v13 = vld [vmem:[%s237_s1 + $0x38] sm:$0xff]  ;;  %v25_v19 = vld [vmem:[%s237_s1 + $0x60] sm:$0xff]  ;;  %s118_s10 = sshll.u32 %s170_s9, 4  ;;  %s120_s12 = sshll.u32 %s238_s2, 4  ;;  %s119_s10 = int_to_ptr.vmem [resolvable:$true] %s118_s10  ;;  %s121_s12 = int_to_ptr.hbm [resolvable:$true] %s120_s12 }
   0x6   :  { %91 = vmatpush.msra.mxu2 %v22_v7  ;;  %v19_v14 = vld [vmem:[%s237_s1 + $0x30] sm:$0xff]  ;;  %v24_v15 = vld [vmem:[%s237_s1 + $0x58] sm:$0xff]  ;;  %s171_s13 = smov 128   ;;  %s172_s14 = smov 8  }
   0x7   :  { %69 = vmatpush.msra.mxu1 %v16_v5 }
   0x8   :  { %92 = vmatpush.msra.mxu2 %v21_v12 }
   0x9   :  { %70 = vmatpush.msra.mxu1 %v15_v6 }
   0xa   :  { %93 = vmatpush.msra.mxu2 %v20_v13 }
   0xc   :  { %94 = vmatpush.msra.mxu2 %v19_v14 }
  0x82   :  { %v47_v9 = vpop.f32.mrf.mxu0 }
  0x83   :  { %v48_v10 = vadd.f32 %v47_v9, %v23_v8 }
  0x85   :  { %v50_v11 = vmax.f32 %v48_v10, 0.0 }
  0x87   :  { %133 = vmatmul.msk.f32.vlgmr.msra.gmra.mxu1 %vm51_vm1, %v50_v11 }
 0x104   :  { %v72_v16 = vpop.f32.mrf.mxu1 }
 0x105   :  { %v73_v17 = vadd.f32 %v72_v16, %v24_v15 }
 0x107   :  { %v75_v18 = vmax.f32 %v73_v17, 0.0 }
 0x109   :  { %134 = vmatmul.msk.f32.vlgmr.msra.gmra.mxu2 %vm51_vm1, %v75_v18 }
 0x18c   :  { %v96_v20 = vpop.f32.mrf.mxu2 }
 0x18d   :  { %v97_v21 = vadd.f32 %v96_v20, %v25_v19 }
 0x18f   :  { %139 = vtanh.f32 %v97_v21  ;;  %105 = vst.msk [vmem:[#allocation2] sm:$0xff] %vm104_vm2, %v97_v21 }
 0x195   :  { %v140_v22 = vpop.eup %139 }
 0x196   :  { %113 = vst.msk [vmem:[#allocation2 + $0x10] sm:$0xff] %vm104_vm2, %v140_v22  ;;  %v100_v23 = vmul.f32 3.5, %v140_v22 }
 0x198   :  { %v101_v24 = vadd.f32 -1.5, %v100_v23 }
 0x19a   :  { %v102_v25 = vmul.f32 1.442695, %v101_v24 }
 0x19c   :  { %141 = vpow2.f32 %v102_v25 }
 0x1a2   :  { %v142_v26 = vpop.eup %141 }
 0x1a3   :  { %107 = vrot.lane.b32.xlu0 %v142_v26, %s169_s8 }
 0x215   :  { %v108_v27 = vpop.permute.xlu0 %107 }
 0x216   :  { %111 = vst.msk [vmem:[#allocation2 + $0x8] sm:$0xff] %vm104_vm2, %v108_v27 }
 0x217   :  { %126 = dma.vmem_to_hbm [thread:$0]  %s119_s10, 384, %s121_s12, [#allocation3], %s171_s13, %s171_s13, %s172_s14  }
 0x218   :  { %167 = dma.done.wait [#allocation3], 384  }
 0x219   :  { %168 = vsyncadd [#allocation3], 4294966912 }
 0x21a   :  { %131 = vsyncpa [#allocation3], 1 }

</bundles_post_ra>
